<compile_context>
chip_gen: v7x
topology: tpu7x:2x2x1
jax: 0.10.0
libtpu: 0.0.40
codegen_flags: <defaults>
</compile_context>

<pallas_src>
import jax
import jax.numpy as jnp
from jax import lax
from jax.experimental import pallas as pl
from jax.experimental.pallas import tpu as pltpu

BN_EPS = 1e-5
TILE_M = 2048   # pooled-output rows per grid step (amortizes ~0.35 us/step overhead)


def _round_up(x, m):
    return (x + m - 1) // m * m


def _conv_block_kernel(p_ref, w_ref, prm_ref, o_ref):
    """Fused Conv3x3(+bias) -> ReLU -> BatchNorm(eval affine) -> MaxPool2x2 for one row tile.

    p_ref   : (tile_m, K)     bf16  4x4 pool-window im2col patches (K = 16*Cin)
    w_ref   : (K, 4*Cout)     bf16  conv weight scattered per 2x2-pool position, concat on Cout
    prm_ref : (3, 4*Cout)     f32   rows = [conv_bias; bn_scale; bn_bias], tiled per position
    o_ref   : (tile_m, Cout)        pooled output rows (bf16 for inner layers, f32 for the last)
    """
    cout = o_ref.shape[-1]

    # One full-width MXU matmul: lanes [p*Cout:(p+1)*Cout] = conv output at pool position p.
    d = jnp.dot(p_ref[...], w_ref[...], preferred_element_type=jnp.float32)

    # bias -> ReLU -> BN affine on all four pool positions at once (exact for any sign of scale).
    y = jnp.maximum(d + prm_ref[0:1, :], 0.0) * prm_ref[1:2, :] + prm_ref[2:3, :]

    # 2x2 max-pool = max over the 4 Cout-wide lane groups via cyclic lane rolls (XLU slot).
    y = jnp.maximum(y, pltpu.roll(y, shift=cout, axis=1))
    y = jnp.maximum(y, pltpu.roll(y, shift=2 * cout, axis=1))

    # Every Cout-wide lane group now holds the pooled value; store the first group.
    o_ref[...] = y[:, :cout].astype(o_ref.dtype)


def _pool_window_patches(x_bf16):
    """(B,H,W,Cin) NHWC -> (B*Ho*Wo, 16*Cin): the 4x4 padded-input window feeding each
    2x2-pooled output pixel (covers all four shifted 3x3 conv taps of that window)."""
    B, H, W, Cin = x_bf16.shape
    Ho, Wo = H // 2, W // 2
    xp = jnp.pad(x_bf16, ((0, 0), (1, 1), (1, 1), (0, 0)))
    pieces = [xp[:, r:r + H:2, c:c + W:2, :]          # (B, Ho, Wo, Cin)
              for r in range(4) for c in range(4)]
    return jnp.concatenate(pieces, axis=-1).reshape(B * Ho * Wo, 16 * Cin)


def _scatter_pool_weights(w_hwio):
    """(3,3,Cin,Cout) -> (16*Cin, 4*Cout): the conv weight embedded (with zeros) into 4x4
    window coordinates; the four 2x2-pool positions are concatenated along the Cout axis."""
    Cin, Cout = w_hwio.shape[2], w_hwio.shape[3]
    w4 = jnp.zeros((4, 4, 4, Cin, Cout), jnp.float32)
    p = 0
    for dh in range(2):
        for dw in range(2):
            w4 = w4.at[p, dh:dh + 3, dw:dw + 3, :, :].set(w_hwio)
            p += 1
    w4 = w4.reshape(4, 16 * Cin, Cout)                       # (pos, K, Cout)
    return jnp.transpose(w4, (1, 0, 2)).reshape(16 * Cin, 4 * Cout)


def conv_block(x, w_hwio, conv_b, gamma, beta, r_mean, r_var, out_dtype=jnp.bfloat16):
    """One convLayer on NHWC input -> NHWC output with halved spatial size."""
    B, H, W, Cin = x.shape
    Cout = w_hwio.shape[-1]
    Ho, Wo = H // 2, W // 2
    Mp = B * Ho * Wo
    K = 16 * Cin                                   # no padding to 128 (full-dim block is legal)

    xb = x if x.dtype == jnp.bfloat16 else x.astype(jnp.bfloat16)
    patches = _pool_window_patches(xb)             # (Mp, K) bf16

    # Tile Mp; keep >= 2 grid blocks whenever possible so "parallel" can use both v7x cores.
    if Mp > TILE_M:
        tile_m = TILE_M
    else:
        tile_m = min(_round_up(max((Mp + 1) // 2, 8), 8), _round_up(Mp, 8))
    Mp_pad = _round_up(Mp, tile_m)
    if Mp_pad > Mp:
        patches = jnp.pad(patches, ((0, Mp_pad - Mp), (0, 0)))

    w_cat = _scatter_pool_weights(w_hwio).astype(jnp.bfloat16)     # (K, 4*Cout) bf16

    inv_std = 1.0 / jnp.sqrt(r_var + BN_EPS)
    scale = gamma * inv_std
    prm = jnp.stack([jnp.tile(conv_b, 4),
                     jnp.tile(scale, 4),
                     jnp.tile(beta - r_mean * scale, 4)], axis=0)  # (3, 4*Cout) f32

    out = pl.pallas_call(
        _conv_block_kernel,
        out_shape=jax.ShapeDtypeStruct((Mp_pad, Cout), out_dtype),
        grid=(Mp_pad // tile_m,),
        in_specs=[
            pl.BlockSpec((tile_m, K), lambda i: (i, 0)),          # streamed / double-buffered
            pl.BlockSpec((K, 4 * Cout), lambda i: (0, 0)),        # grid-constant weights
            pl.BlockSpec((3, 4 * Cout), lambda i: (0, 0)),        # grid-constant per-ch params
        ],
        out_specs=pl.BlockSpec((tile_m, Cout), lambda i: (i, 0)),
        compiler_params=pltpu.CompilerParams(
            dimension_semantics=("parallel",)),                   # shard Mp tiles across TCs
    )(patches, w_cat, prm)

    return out[:Mp].reshape(B, Ho, Wo, Cout)


def init_classifier_params(key, layer_size=32, num_channels=4):
    """Deterministic synthetic parameters for the 4 convLayers (HWIO conv weights)."""
    params = []
    cin = num_channels
    for _ in range(4):
        key, kw, kb, kg, kbe, km, kv = jax.random.split(key, 7)
        w = 0.1 * jax.random.normal(kw, (3, 3, cin, layer_size), jnp.float32)
        b = 0.1 * jax.random.normal(kb, (layer_size,), jnp.float32)
        gamma = 1.0 + 0.1 * jax.random.normal(kg, (layer_size,), jnp.float32)
        beta = 0.1 * jax.random.normal(kbe, (layer_size,), jnp.float32)
        mean = 0.1 * jax.random.normal(km, (layer_size,), jnp.float32)
        var = jax.random.uniform(kv, (layer_size,), jnp.float32, 0.5, 1.5)
        params.append((w, b, gamma, beta, mean, var))
        cin = layer_size
    return params


def classifier_forward(image_input_nchw, params):
    # TODO(synk): training-mode BatchNorm (batch statistics) and Dropout are not modeled;
    #             this reproduces the PyTorch eval()-mode forward pass.
    x = jnp.transpose(image_input_nchw, (0, 2, 3, 1))   # NCHW -> NHWC
    n_layers = len(params)
    for li, (w, b, gamma, beta, mean, var) in enumerate(params):
        out_dtype = jnp.float32 if li == n_layers - 1 else jnp.bfloat16
        x = conv_block(x, w, b, gamma, beta, mean, var, out_dtype=out_dtype)
    x = jnp.transpose(x, (0, 3, 1, 2))                   # NHWC -> NCHW (match .view order)
    return x.reshape(x.shape[0], -1)


def reference_forward(image_input_nchw, params):
    """Pure-JAX reference (XLA conv / reduce_window) for validation."""
    x = jnp.transpose(image_input_nchw, (0, 2, 3, 1))
    for (w, b, gamma, beta, mean, var) in params:
        y = lax.conv_general_dilated(
            x, w, (1, 1), "SAME",
            dimension_numbers=("NHWC", "HWIO", "NHWC"))
        y = jnp.maximum(y + b.reshape(1, 1, 1, -1), 0.0)
        y = (y - mean) / jnp.sqrt(var + BN_EPS) * gamma + beta
        x = lax.reduce_window(y, -jnp.inf, lax.max, (1, 2, 2, 1), (1, 2, 2, 1), "VALID")
    x = jnp.transpose(x, (0, 3, 1, 2))
    return x.reshape(x.shape[0], -1)


if __name__ == "__main__":
    key = jax.random.PRNGKey(0)
    key, kx, kp = jax.random.split(key, 3)

    B, C, S = 2, 4, 16            # batch, num_channels, image_size (small shapes)
    layer_size = 32
    x = jax.random.normal(kx, (B, C, S, S), jnp.float32)   # PyTorch-style NCHW input
    params = init_classifier_params(kp, layer_size=layer_size, num_channels=C)

    out = jax.jit(lambda xx: classifier_forward(xx, params))(x)
    out = jax.block_until_ready(out)

    final = S // 16               # image_size // (2*2*2*2)
    assert out.shape == (B, final * final * layer_size), out.shape

    ref = reference_forward(x, params)
    # Tolerance accounts for bf16 MXU inputs / bf16 inter-layer activations across 4 layers.
    assert jnp.allclose(out, ref, rtol=3e-2, atol=3e-2), float(jnp.max(jnp.abs(out - ref)))

    print("KERNEL_OK")
</pallas_src>

<mosaic_0001>
module attributes {stable_mosaic.version = 11 : i64} {
  func.func @_conv_block_kernel(%arg0: i32, %arg1: memref<64x64xbf16, #tpu.memory_space<vmem>>, %arg2: memref<64x128xbf16, #tpu.memory_space<vmem>>, %arg3: memref<3x128xf32, #tpu.memory_space<vmem>>, %arg4: memref<64x32xbf16, #tpu.memory_space<vmem>>) attributes {dimension_semantics = [#tpu.dimension_semantics<parallel>], iteration_bounds = array<i64: 2>, scalar_prefetch = 0 : i64, scratch_operands = 0 : i64, tpu.core_type = #tpu.core_type<tc>, window_params = [{transform_indices = @transform_0, window_bounds = array<i64: 64, 64>}, {pipeline_mode = #tpu.pipeline_mode<synchronous>, transform_indices = @transform_1, window_bounds = array<i64: 64, 128>}, {pipeline_mode = #tpu.pipeline_mode<synchronous>, transform_indices = @transform_2, window_bounds = array<i64: 3, 128>}, {transform_indices = @transform_3, window_bounds = array<i64: 64, 32>}]} {
    %c0 = arith.constant 0 : index
    %c0_0 = arith.constant 0 : index
    %0 = vector.load %arg1[%c0, %c0_0] : memref<64x64xbf16, #tpu.memory_space<vmem>>, vector<64x64xbf16>
    %c0_1 = arith.constant 0 : index
    %c0_2 = arith.constant 0 : index
    %1 = vector.load %arg2[%c0_1, %c0_2] : memref<64x128xbf16, #tpu.memory_space<vmem>>, vector<64x128xbf16>
    %cst = arith.constant dense<0.000000e+00> : vector<64x128xf32>
    %2 = tpu.matmul %0, %1, %cst {dimension_numbers = #tpu.dot_dimension_numbers<[1], [0], [0], [1], [0, 0, 1, 1], [], []>} : vector<64x64xbf16>, vector<64x128xbf16>, vector<64x128xf32> -> vector<64x128xf32>
    %c0_3 = arith.constant 0 : index
    %c0_4 = arith.constant 0 : index
    %3 = vector.load %arg3[%c0_3, %c0_4] : memref<3x128xf32, #tpu.memory_space<vmem>>, vector<1x128xf32>
    %4 = vector.broadcast %3 : vector<1x128xf32> to vector<64x128xf32>
    %5 = arith.addf %2, %4 : vector<64x128xf32>
    %cst_5 = arith.constant 0.000000e+00 : f32
    %6 = vector.broadcast %cst_5 : f32 to vector<64x128xf32>
    %7 = arith.maximumf %5, %6 : vector<64x128xf32>
    %c1 = arith.constant 1 : index
    %c0_6 = arith.constant 0 : index
    %8 = vector.load %arg3[%c1, %c0_6] : memref<3x128xf32, #tpu.memory_space<vmem>>, vector<1x128xf32>
    %9 = vector.broadcast %8 : vector<1x128xf32> to vector<64x128xf32>
    %10 = arith.mulf %7, %9 : vector<64x128xf32>
    %c2 = arith.constant 2 : index
    %c0_7 = arith.constant 0 : index
    %11 = vector.load %arg3[%c2, %c0_7] : memref<3x128xf32, #tpu.memory_space<vmem>>, vector<1x128xf32>
    %12 = vector.broadcast %11 : vector<1x128xf32> to vector<64x128xf32>
    %13 = arith.addf %10, %12 : vector<64x128xf32>
    %c32_i32 = arith.constant 32 : i32
    %14 = tpu.dynamic_rotate %13 by %c32_i32 dim 1 : vector<64x128xf32>, i32 -> vector<64x128xf32>
    %15 = arith.maximumf %13, %14 : vector<64x128xf32>
    %c64_i32 = arith.constant 64 : i32
    %16 = tpu.dynamic_rotate %15 by %c64_i32 dim 1 : vector<64x128xf32>, i32 -> vector<64x128xf32>
    %17 = arith.maximumf %15, %16 : vector<64x128xf32>
    %18 = vector.extract_strided_slice %17 {offsets = [0, 0], sizes = [64, 32], strides = [1, 1]} : vector<64x128xf32> to vector<64x32xf32>
    %19 = arith.truncf %18 : vector<64x32xf32> to vector<64x32xbf16>
    %c0_8 = arith.constant 0 : index
    %c0_9 = arith.constant 0 : index
    %20 = vector.load %arg4[%c0_8, %c0_9] : memref<64x32xbf16, #tpu.memory_space<vmem>>, vector<64x32xbf16>
    tpu.vector_store %arg4[%c0_8, %c0_9], %19 {strides = array<i32>} : memref<64x32xbf16, #tpu.memory_space<vmem>>, vector<64x32xbf16>,
    return
  }
  func.func @transform_0(%arg0: i32) -> (i32, i32) {
    %c0_i32 = arith.constant 0 : i32
    %c0_i32_0 = arith.constant 0 : i32
    return %arg0, %c0_i32 : i32, i32
  }
  func.func @transform_1(%arg0: i32) -> (i32, i32) {
    %c0_i32 = arith.constant 0 : i32
    %c0_i32_0 = arith.constant 0 : i32
    %c0_i32_1 = arith.constant 0 : i32
    return %c0_i32, %c0_i32_0 : i32, i32
  }
  func.func @transform_2(%arg0: i32) -> (i32, i32) {
    %c0_i32 = arith.constant 0 : i32
    %c0_i32_0 = arith.constant 0 : i32
    %c0_i32_1 = arith.constant 0 : i32
    return %c0_i32, %c0_i32_0 : i32, i32
  }
  func.func @transform_3(%arg0: i32) -> (i32, i32) {
    %c0_i32 = arith.constant 0 : i32
    %c0_i32_0 = arith.constant 0 : i32
    return %arg0, %c0_i32 : i32, i32
  }
}

module attributes {stable_mosaic.version = 11 : i64} {
  func.func @_conv_block_kernel(%arg0: i32, %arg1: memref<16x512xbf16, #tpu.memory_space<vmem>>, %arg2: memref<512x128xbf16, #tpu.memory_space<vmem>>, %arg3: memref<3x128xf32, #tpu.memory_space<vmem>>, %arg4: memref<16x32xbf16, #tpu.memory_space<vmem>>) attributes {dimension_semantics = [#tpu.dimension_semantics<parallel>], iteration_bounds = array<i64: 2>, scalar_prefetch = 0 : i64, scratch_operands = 0 : i64, tpu.core_type = #tpu.core_type<tc>, window_params = [{transform_indices = @transform_0, window_bounds = array<i64: 16, 512>}, {pipeline_mode = #tpu.pipeline_mode<synchronous>, transform_indices = @transform_1, window_bounds = array<i64: 512, 128>}, {pipeline_mode = #tpu.pipeline_mode<synchronous>, transform_indices = @transform_2, window_bounds = array<i64: 3, 128>}, {transform_indices = @transform_3, window_bounds = array<i64: 16, 32>}]} {
    %c0 = arith.constant 0 : index
    %c0_0 = arith.constant 0 : index
    %0 = vector.load %arg1[%c0, %c0_0] : memref<16x512xbf16, #tpu.memory_space<vmem>>, vector<16x512xbf16>
    %c0_1 = arith.constant 0 : index
    %c0_2 = arith.constant 0 : index
    %1 = vector.load %arg2[%c0_1, %c0_2] : memref<512x128xbf16, #tpu.memory_space<vmem>>, vector<512x128xbf16>
    %cst = arith.constant dense<0.000000e+00> : vector<16x128xf32>
    %2 = tpu.matmul %0, %1, %cst {dimension_numbers = #tpu.dot_dimension_numbers<[1], [0], [0], [1], [0, 0, 1, 1], [], []>} : vector<16x512xbf16>, vector<512x128xbf16>, vector<16x128xf32> -> vector<16x128xf32>
    %c0_3 = arith.constant 0 : index
    %c0_4 = arith.constant 0 : index
    %3 = vector.load %arg3[%c0_3, %c0_4] : memref<3x128xf32, #tpu.memory_space<vmem>>, vector<1x128xf32>
    %4 = vector.broadcast %3 : vector<1x128xf32> to vector<16x128xf32>
    %5 = arith.addf %2, %4 : vector<16x128xf32>
    %cst_5 = arith.constant 0.000000e+00 : f32
    %6 = vector.broadcast %cst_5 : f32 to vector<16x128xf32>
    %7 = arith.maximumf %5, %6 : vector<16x128xf32>
    %c1 = arith.constant 1 : index
    %c0_6 = arith.constant 0 : index
    %8 = vector.load %arg3[%c1, %c0_6] : memref<3x128xf32, #tpu.memory_space<vmem>>, vector<1x128xf32>
    %9 = vector.broadcast %8 : vector<1x128xf32> to vector<16x128xf32>
    %10 = arith.mulf %7, %9 : vector<16x128xf32>
    %c2 = arith.constant 2 : index
    %c0_7 = arith.constant 0 : index
    %11 = vector.load %arg3[%c2, %c0_7] : memref<3x128xf32, #tpu.memory_space<vmem>>, vector<1x128xf32>
    %12 = vector.broadcast %11 : vector<1x128xf32> to vector<16x128xf32>
    %13 = arith.addf %10, %12 : vector<16x128xf32>
    %c32_i32 = arith.constant 32 : i32
    %14 = tpu.dynamic_rotate %13 by %c32_i32 dim 1 : vector<16x128xf32>, i32 -> vector<16x128xf32>
    %15 = arith.maximumf %13, %14 : vector<16x128xf32>
    %c64_i32 = arith.constant 64 : i32
    %16 = tpu.dynamic_rotate %15 by %c64_i32 dim 1 : vector<16x128xf32>, i32 -> vector<16x128xf32>
    %17 = arith.maximumf %15, %16 : vector<16x128xf32>
    %18 = vector.extract_strided_slice %17 {offsets = [0, 0], sizes = [16, 32], strides = [1, 1]} : vector<16x128xf32> to vector<16x32xf32>
    %19 = arith.truncf %18 : vector<16x32xf32> to vector<16x32xbf16>
    %c0_8 = arith.constant 0 : index
    %c0_9 = arith.constant 0 : index
    %20 = vector.load %arg4[%c0_8, %c0_9] : memref<16x32xbf16, #tpu.memory_space<vmem>>, vector<16x32xbf16>
    tpu.vector_store %arg4[%c0_8, %c0_9], %19 {strides = array<i32>} : memref<16x32xbf16, #tpu.memory_space<vmem>>, vector<16x32xbf16>,
    return
  }
  func.func @transform_0(%arg0: i32) -> (i32, i32) {
    %c0_i32 = arith.constant 0 : i32
    %c0_i32_0 = arith.constant 0 : i32
    return %arg0, %c0_i32 : i32, i32
  }
  func.func @transform_1(%arg0: i32) -> (i32, i32) {
    %c0_i32 = arith.constant 0 : i32
    %c0_i32_0 = arith.constant 0 : i32
    %c0_i32_1 = arith.constant 0 : i32
    return %c0_i32, %c0_i32_0 : i32, i32
  }
  func.func @transform_2(%arg0: i32) -> (i32, i32) {
    %c0_i32 = arith.constant 0 : i32
    %c0_i32_0 = arith.constant 0 : i32
    %c0_i32_1 = arith.constant 0 : i32
    return %c0_i32, %c0_i32_0 : i32, i32
  }
  func.func @transform_3(%arg0: i32) -> (i32, i32) {
    %c0_i32 = arith.constant 0 : i32
    %c0_i32_0 = arith.constant 0 : i32
    return %arg0, %c0_i32 : i32, i32
  }
}

module attributes {stable_mosaic.version = 11 : i64} {
  func.func @_conv_block_kernel(%arg0: i32, %arg1: memref<8x512xbf16, #tpu.memory_space<vmem>>, %arg2: memref<512x128xbf16, #tpu.memory_space<vmem>>, %arg3: memref<3x128xf32, #tpu.memory_space<vmem>>, %arg4: memref<8x32xbf16, #tpu.memory_space<vmem>>) attributes {dimension_semantics = [#tpu.dimension_semantics<parallel>], iteration_bounds = array<i64: 1>, scalar_prefetch = 0 : i64, scratch_operands = 0 : i64, tpu.core_type = #tpu.core_type<tc>, window_params = [{transform_indices = @transform_0, window_bounds = array<i64: 8, 512>}, {pipeline_mode = #tpu.pipeline_mode<synchronous>, transform_indices = @transform_1, window_bounds = array<i64: 512, 128>}, {pipeline_mode = #tpu.pipeline_mode<synchronous>, transform_indices = @transform_2, window_bounds = array<i64: 3, 128>}, {transform_indices = @transform_3, window_bounds = array<i64: 8, 32>}]} {
    %c0 = arith.constant 0 : index
    %c0_0 = arith.constant 0 : index
    %0 = vector.load %arg1[%c0, %c0_0] : memref<8x512xbf16, #tpu.memory_space<vmem>>, vector<8x512xbf16>
    %c0_1 = arith.constant 0 : index
    %c0_2 = arith.constant 0 : index
    %1 = vector.load %arg2[%c0_1, %c0_2] : memref<512x128xbf16, #tpu.memory_space<vmem>>, vector<512x128xbf16>
    %cst = arith.constant dense<0.000000e+00> : vector<8x128xf32>
    %2 = tpu.matmul %0, %1, %cst {dimension_numbers = #tpu.dot_dimension_numbers<[1], [0], [0], [1], [0, 0, 1, 1], [], []>} : vector<8x512xbf16>, vector<512x128xbf16>, vector<8x128xf32> -> vector<8x128xf32>
    %c0_3 = arith.constant 0 : index
    %c0_4 = arith.constant 0 : index
    %3 = vector.load %arg3[%c0_3, %c0_4] : memref<3x128xf32, #tpu.memory_space<vmem>>, vector<1x128xf32>
    %4 = vector.broadcast %3 : vector<1x128xf32> to vector<8x128xf32>
    %5 = arith.addf %2, %4 : vector<8x128xf32>
    %cst_5 = arith.constant 0.000000e+00 : f32
    %6 = vector.broadcast %cst_5 : f32 to vector<8x128xf32>
    %7 = arith.maximumf %5, %6 : vector<8x128xf32>
    %c1 = arith.constant 1 : index
    %c0_6 = arith.constant 0 : index
    %8 = vector.load %arg3[%c1, %c0_6] : memref<3x128xf32, #tpu.memory_space<vmem>>, vector<1x128xf32>
    %9 = vector.broadcast %8 : vector<1x128xf32> to vector<8x128xf32>
    %10 = arith.mulf %7, %9 : vector<8x128xf32>
    %c2 = arith.constant 2 : index
    %c0_7 = arith.constant 0 : index
    %11 = vector.load %arg3[%c2, %c0_7] : memref<3x128xf32, #tpu.memory_space<vmem>>, vector<1x128xf32>
    %12 = vector.broadcast %11 : vector<1x128xf32> to vector<8x128xf32>
    %13 = arith.addf %10, %12 : vector<8x128xf32>
    %c32_i32 = arith.constant 32 : i32
    %14 = tpu.dynamic_rotate %13 by %c32_i32 dim 1 : vector<8x128xf32>, i32 -> vector<8x128xf32>
    %15 = arith.maximumf %13, %14 : vector<8x128xf32>
    %c64_i32 = arith.constant 64 : i32
    %16 = tpu.dynamic_rotate %15 by %c64_i32 dim 1 : vector<8x128xf32>, i32 -> vector<8x128xf32>
    %17 = arith.maximumf %15, %16 : vector<8x128xf32>
    %18 = vector.extract_strided_slice %17 {offsets = [0, 0], sizes = [8, 32], strides = [1, 1]} : vector<8x128xf32> to vector<8x32xf32>
    %19 = arith.truncf %18 : vector<8x32xf32> to vector<8x32xbf16>
    %c0_8 = arith.constant 0 : index
    %c0_9 = arith.constant 0 : index
    %20 = vector.load %arg4[%c0_8, %c0_9] : memref<8x32xbf16, #tpu.memory_space<vmem>>, vector<8x32xbf16>
    tpu.vector_store %arg4[%c0_8, %c0_9], %19 {strides = array<i32>} : memref<8x32xbf16, #tpu.memory_space<vmem>>, vector<8x32xbf16>,
    return
  }
  func.func @transform_0(%arg0: i32) -> (i32, i32) {
    %c0_i32 = arith.constant 0 : i32
    %c0_i32_0 = arith.constant 0 : i32
    return %arg0, %c0_i32 : i32, i32
  }
  func.func @transform_1(%arg0: i32) -> (i32, i32) {
    %c0_i32 = arith.constant 0 : i32
    %c0_i32_0 = arith.constant 0 : i32
    %c0_i32_1 = arith.constant 0 : i32
    return %c0_i32, %c0_i32_0 : i32, i32
  }
  func.func @transform_2(%arg0: i32) -> (i32, i32) {
    %c0_i32 = arith.constant 0 : i32
    %c0_i32_0 = arith.constant 0 : i32
    %c0_i32_1 = arith.constant 0 : i32
    return %c0_i32, %c0_i32_0 : i32, i32
  }
  func.func @transform_3(%arg0: i32) -> (i32, i32) {
    %c0_i32 = arith.constant 0 : i32
    %c0_i32_0 = arith.constant 0 : i32
    return %arg0, %c0_i32 : i32, i32
  }
}

module attributes {stable_mosaic.version = 11 : i64} {
  func.func @_conv_block_kernel(%arg0: i32, %arg1: memref<8x512xbf16, #tpu.memory_space<vmem>>, %arg2: memref<512x128xbf16, #tpu.memory_space<vmem>>, %arg3: memref<3x128xf32, #tpu.memory_space<vmem>>, %arg4: memref<8x32xf32, #tpu.memory_space<vmem>>) attributes {dimension_semantics = [#tpu.dimension_semantics<parallel>], iteration_bounds = array<i64: 1>, scalar_prefetch = 0 : i64, scratch_operands = 0 : i64, tpu.core_type = #tpu.core_type<tc>, window_params = [{transform_indices = @transform_0, window_bounds = array<i64: 8, 512>}, {pipeline_mode = #tpu.pipeline_mode<synchronous>, transform_indices = @transform_1, window_bounds = array<i64: 512, 128>}, {pipeline_mode = #tpu.pipeline_mode<synchronous>, transform_indices = @transform_2, window_bounds = array<i64: 3, 128>}, {transform_indices = @transform_3, window_bounds = array<i64: 8, 32>}]} {
    %c0 = arith.constant 0 : index
    %c0_0 = arith.constant 0 : index
    %0 = vector.load %arg1[%c0, %c0_0] : memref<8x512xbf16, #tpu.memory_space<vmem>>, vector<8x512xbf16>
    %c0_1 = arith.constant 0 : index
    %c0_2 = arith.constant 0 : index
    %1 = vector.load %arg2[%c0_1, %c0_2] : memref<512x128xbf16, #tpu.memory_space<vmem>>, vector<512x128xbf16>
    %cst = arith.constant dense<0.000000e+00> : vector<8x128xf32>
    %2 = tpu.matmul %0, %1, %cst {dimension_numbers = #tpu.dot_dimension_numbers<[1], [0], [0], [1], [0, 0, 1, 1], [], []>} : vector<8x512xbf16>, vector<512x128xbf16>, vector<8x128xf32> -> vector<8x128xf32>
    %c0_3 = arith.constant 0 : index
    %c0_4 = arith.constant 0 : index
    %3 = vector.load %arg3[%c0_3, %c0_4] : memref<3x128xf32, #tpu.memory_space<vmem>>, vector<1x128xf32>
    %4 = vector.broadcast %3 : vector<1x128xf32> to vector<8x128xf32>
    %5 = arith.addf %2, %4 : vector<8x128xf32>
    %cst_5 = arith.constant 0.000000e+00 : f32
    %6 = vector.broadcast %cst_5 : f32 to vector<8x128xf32>
    %7 = arith.maximumf %5, %6 : vector<8x128xf32>
    %c1 = arith.constant 1 : index
    %c0_6 = arith.constant 0 : index
    %8 = vector.load %arg3[%c1, %c0_6] : memref<3x128xf32, #tpu.memory_space<vmem>>, vector<1x128xf32>
    %9 = vector.broadcast %8 : vector<1x128xf32> to vector<8x128xf32>
    %10 = arith.mulf %7, %9 : vector<8x128xf32>
    %c2 = arith.constant 2 : index
    %c0_7 = arith.constant 0 : index
    %11 = vector.load %arg3[%c2, %c0_7] : memref<3x128xf32, #tpu.memory_space<vmem>>, vector<1x128xf32>
    %12 = vector.broadcast %11 : vector<1x128xf32> to vector<8x128xf32>
    %13 = arith.addf %10, %12 : vector<8x128xf32>
    %c32_i32 = arith.constant 32 : i32
    %14 = tpu.dynamic_rotate %13 by %c32_i32 dim 1 : vector<8x128xf32>, i32 -> vector<8x128xf32>
    %15 = arith.maximumf %13, %14 : vector<8x128xf32>
    %c64_i32 = arith.constant 64 : i32
    %16 = tpu.dynamic_rotate %15 by %c64_i32 dim 1 : vector<8x128xf32>, i32 -> vector<8x128xf32>
    %17 = arith.maximumf %15, %16 : vector<8x128xf32>
    %18 = vector.extract_strided_slice %17 {offsets = [0, 0], sizes = [8, 32], strides = [1, 1]} : vector<8x128xf32> to vector<8x32xf32>
    %c0_8 = arith.constant 0 : index
    %c0_9 = arith.constant 0 : index
    %19 = vector.load %arg4[%c0_8, %c0_9] : memref<8x32xf32, #tpu.memory_space<vmem>>, vector<8x32xf32>
    tpu.vector_store %arg4[%c0_8, %c0_9], %18 {strides = array<i32>} : memref<8x32xf32, #tpu.memory_space<vmem>>, vector<8x32xf32>,
    return
  }
  func.func @transform_0(%arg0: i32) -> (i32, i32) {
    %c0_i32 = arith.constant 0 : i32
    %c0_i32_0 = arith.constant 0 : i32
    return %arg0, %c0_i32 : i32, i32
  }
  func.func @transform_1(%arg0: i32) -> (i32, i32) {
    %c0_i32 = arith.constant 0 : i32
    %c0_i32_0 = arith.constant 0 : i32
    %c0_i32_1 = arith.constant 0 : i32
    return %c0_i32, %c0_i32_0 : i32, i32
  }
  func.func @transform_2(%arg0: i32) -> (i32, i32) {
    %c0_i32 = arith.constant 0 : i32
    %c0_i32_0 = arith.constant 0 : i32
    %c0_i32_1 = arith.constant 0 : i32
    return %c0_i32, %c0_i32_0 : i32, i32
  }
  func.func @transform_3(%arg0: i32) -> (i32, i32) {
    %c0_i32 = arith.constant 0 : i32
    %c0_i32_0 = arith.constant 0 : i32
    return %arg0, %c0_i32 : i32, i32
  }
}

</mosaic_0001>

<bundles_post_ra>
// kernel: tile.50
= control target key start
LH: loop header
LB: loop body
LE: loop exit
PB: predicated region body
PF: predicated region fallthrough
CT: control target
= control target key end

     0   :  { %s22_s0 = inlined_call_operand.vmem [shape: f32[32], index: 0, kind: input, shape index: {}]   ;;  %s23_s1 = inlined_call_operand.vmem [shape: f32[4,32], index: 1, kind: output, shape index: {}]  }
   0x1   :  { %v4_v0 = vld [vmem:[%s22_s0] ss:$0 sm:$0xff] }
   0x2   :  { %5 = vst [vmem:[%s23_s1] sm:$0xf] %v4_v0 }

// kernel: tile.57
= control target key start
LH: loop header
LB: loop body
LE: loop exit
PB: predicated region body
PF: predicated region fallthrough
CT: control target
= control target key end

     0   :  { %vm7_vm0 = vcmask 261120   ;;  %s37_s8 = smov 32   ;;  %s38_s9 = smov 64   ;;  %vm13_vm1 = vcmask 1048320   ;;  %vm19_vm2 = vcmask 785920   ;;  %vm25_vm3 = vcmask 523520   ;;  %s55_s0 = inlined_call_operand.vmem [shape: f32[4,32], index: 0, kind: input, shape index: {}]   ;;  %s56_s1 = inlined_call_operand.vmem [shape: f32[1,128], index: 1, kind: output, shape index: {}]  }
   0x1   :  { %v4_v0 = vld [vmem:[%s55_s0] sm:$0xf]  ;;  %s36_s0 = smov 96  }
   0x2   :  { %5 = vst [vmem:[#allocation1] sm:$0xf] %v4_v0 }
   0x9   :  { %v10_v1 = vld [vmem:[#allocation1 + $0x3] sm:$0x1]   ;;  %v22_v2 = vld [vmem:[#allocation1 + $0x1] sm:$0x1]   ;;  %v6_v3 = vld [vmem:[#allocation1] sm:$0x1]  }
   0xa   :  { %11 = vrot.lane.b32.xlu0 %v10_v1, %s36_s0  ;;  %23 = vrot.lane.b32.xlu1 %v22_v2, %s37_s8  ;;  %v16_v4 = vld [vmem:[#allocation1 + $0x2] sm:$0x1]   ;;  %8 = vst.msk [vmem:[#allocation0] sm:$0x1] %vm7_vm0, %v6_v3  }
   0xe   :  { %17 = vrot.lane.b32.xlu0 %v16_v4, %s38_s9 }
  0x7c   :  { %v12_v5 = vpop.permute.xlu0 %11   ;;  %v24_v6 = vpop.permute.xlu1 %23  }
  0x7d   :  { %14 = vst.msk [vmem:[#allocation0] sm:$0x1] %vm13_vm1, %v12_v5  }
  0x80   :  { %v18_v7 = vpop.permute.xlu0 %17  }
  0x81   :  { %20 = vst.msk [vmem:[#allocation0] sm:$0x1] %vm19_vm2, %v18_v7  }
  0x82   :  { %26 = vst.msk [vmem:[#allocation0] sm:$0x1] %vm25_vm3, %v24_v6  }
  0x89   :  { %v30_v8 = vld [vmem:[#allocation0] sm:$0x1] }
  0x8a   :  { %32 = vst [vmem:[%s56_s1] sm:$0x1] %v30_v8 }

// kernel: _lambda_.4
= control target key start
LH: loop header
LB: loop body
LE: loop exit
PB: predicated region body
PF: predicated region fallthrough
CT: control target
= control target key end

     0   :  { %s659_s12 = smov 0   ;;  %s726_s0 = inlined_call_operand.vmem [shape: bf16[128,64], index: 0, kind: input, shape index: {}]   ;;  %s727_s1 = inlined_call_operand.vmem [shape: bf16[64,128], index: 1, kind: input, shape index: {}]   ;;  %s728_s2 = inlined_call_operand.vmem [shape: f32[3,128], index: 2, kind: input, shape index: {}]   ;;  %s729_s3 = inlined_call_operand.vmem [shape: bf16[128,32], index: 3, kind: output, shape index: {}]  }
   0x1 LB: > { %s497_s13 = sadd.s32 4294967295, %s635_s12   ;;  %p501_p0 = scmp.ge.s32.totalorder %s635_s12, 1  ;;  %s635_s12 = sphi %s659_s12, %s13_s12  }
   0x2   : > { %p138_p1 = scmp.lt.s32.totalorder %s635_s12, 3 }
   0x4   : > { %p139_p2 = pnand %p501_p0, %p138_p1 }
   0x5   : > { %v621_v0 = vld [vmem:[%s727_s1] sm:$0xff] (!%p139_p2)   ;;  %s502_s16 = sshll.u32 (!%p139_p2), %s497_s13, 3  ;;  %v622_v1 = vld [vmem:[%s727_s1 + $0x8] sm:$0xff] (!%p139_p2)   ;;  %v623_v2 = vld [vmem:[%s727_s1 + $0x10] sm:$0xff] (!%p139_p2)   ;;  %vm240_vm0 = vcmask (!%p139_p2), 523264   ;;  %s637_s6 = smov (!%p139_p2), 32  }
   0x6   : > { %142 = sbr.rel (%p139_p2) target bundleno = 498 (0x1f2), region = 32  ;;  %p163_p3 = scmp.lt.s32.totalorder (!%p139_p2), %s502_s16, 15  ;;  %547 = vmatprep.subr.bf16.mxu0 (!%p139_p2), %v621_v0  ;;  %563 = vmatprep.subr.bf16.mxu1 (!%p139_p2), %v621_v0  ;;  %v624_v3 = vld [vmem:[%s727_s1 + $0x18] sm:$0xff] (!%p139_p2)   ;;  %v506_v8 = vld [vmem:[%s728_s2] ss:$0 sm:$0xff] (!%p139_p2)  ;;  %vm432_vm1 = vcmask (!%p139_p2), 257024  }
   0x7   : > { %548 = vmatpush3.bf16.msra.mxu0 (!%p139_p2), %v621_v0  ;;  %567 = vmatpush3.bf16.msra.mxu1 (!%p139_p2), %v621_v0  ;;  %v519_v19 = vld [vmem:[%s728_s2 + $0x1] ss:$0 sm:$0xff] (!%p139_p2)  ;;  %v520_v36 = vld [vmem:[%s728_s2 + $0x2] ss:$0 sm:$0xff] (!%p139_p2)  ;;  %s638_s7 = smov (!%p139_p2), 64  }
   0x8   : > { %549 = vmatprep.subr.bf16.mxu0 (!%p139_p2), %v622_v1  ;;  %564 = vmatprep.subr.bf16.mxu1 (!%p139_p2), %v622_v1 }
   0xb   : > { %550 = vmatpush3.bf16.msra.mxu0 (!%p139_p2), %v622_v1  ;;  %568 = vmatpush3.bf16.msra.mxu1 (!%p139_p2), %v622_v1 }
   0xc   : > { %551 = vmatprep.subr.bf16.mxu0 (!%p139_p2), %v623_v2  ;;  %565 = vmatprep.subr.bf16.mxu1 (!%p139_p2), %v623_v2 }
   0xd   : > { %s731_s16 = smov (!%p163_p3, %s502_s16), 15 }
   0xe   : > { %s503_s21 = sshll.u32 %s731_s16, 2 }
   0xf   : > { %s166_s26 = scalar_lea.vmem %s726_s0, %s503_s21  ;;  %552 = vmatpush3.bf16.msra.mxu0 %v623_v2  ;;  %569 = vmatpush3.bf16.msra.mxu1 %v623_v2  ;;  %s705_s10 = scalar_lea.vmem %s729_s3, %s503_s21 }
  0x10   : > { %v625_v4 = vld [vmem:[%s166_s26] sm:$0xff]   ;;  %v626_v5 = vld [vmem:[%s166_s26 + $0x10] sm:$0xff]   ;;  %553 = vmatprep.subr.bf16.mxu0 %v624_v3  ;;  %566 = vmatprep.subr.bf16.mxu1 %v624_v3  ;;  %v627_v6 = vld [vmem:[%s166_s26 + $0x8] sm:$0xff]  }
  0x11   : > { %555 = vmatprep.mubr.msk.bf16.mxu0 %vm240_vm0, %v625_v4  ;;  %559 = vmatprep.mubr.msk.bf16.mxu1 %vm240_vm0, %v626_v5  ;;  %v628_v7 = vld [vmem:[%s166_s26 + $0x18] sm:$0xff]  }
  0x13   : > { %554 = vmatpush3.bf16.msra.mxu0 %v624_v3  ;;  %570 = vmatpush3.bf16.msra.mxu1 %v624_v3 }
  0x16   : > { %556 = vmatmul.mubr.msk.bf16.vlgmr.msra.gmra.mrb[0].mxu0 %vm240_vm0, %v627_v6  ;;  %560 = vmatmul.mubr.msk.bf16.vlgmr.msra.gmra.mrb[0].mxu1 %vm240_vm0, %v628_v7 }
  0xe9   : > { %v557_v9 = vpop.f32.mrb[0].mxu0  ;;  %v561_v10 = vpop.f32.mrb[0].mxu1 }
  0xea   : > { %v296_v11 = vadd.f32 %v557_v9, %v506_v8  ;;  %v312_v12 = vadd.f32 %v561_v10, %v506_v8  ;;  %v287_v13 = vpop.f32.mrb[1].mxu0  ;;  %v303_v14 = vpop.f32.mrb[1].mxu1 }
  0xeb   : > { %v288_v15 = vadd.f32 %v506_v8, %v287_v13  ;;  %v304_v16 = vadd.f32 %v506_v8, %v303_v14  ;;  %v558_v17 = vpop.f32.mrb[2].mxu0  ;;  %v562_v18 = vpop.f32.mrb[2].mxu1 }
  0xec   : > { %v324_v20 = vmax.f32 %v312_v12, 0.0  ;;  %v299_v21 = vadd.f32 %v558_v17, %v506_v8  ;;  %v315_v22 = vadd.f32 %v562_v18, %v506_v8  ;;  %v290_v23 = vpop.f32.mrb[3].mxu0  ;;  %v306_v24 = vpop.f32.mrb[3].mxu1  ;;  %v320_v29 = vmax.f32 %v296_v11, 0.0 }
  0xed   : > { %v318_v25 = vmax.f32 %v288_v15, 0.0  ;;  %v322_v26 = vmax.f32 %v304_v16, 0.0  ;;  %v291_v27 = vadd.f32 %v506_v8, %v290_v23  ;;  %v307_v28 = vadd.f32 %v506_v8, %v306_v24 }
  0xee   : > { %v321_v30 = vmax.f32 %v299_v21, 0.0  ;;  %v325_v31 = vmax.f32 %v315_v22, 0.0  ;;  %v337_v37 = vmul.f32 %v519_v19, %v324_v20  ;;  %v333_v43 = vmul.f32 %v519_v19, %v320_v29 }
  0xef   : > { %v331_v32 = vmul.f32 %v519_v19, %v318_v25  ;;  %v335_v33 = vmul.f32 %v519_v19, %v322_v26  ;;  %v319_v34 = vmax.f32 %v291_v27, 0.0  ;;  %v323_v35 = vmax.f32 %v307_v28, 0.0 }
  0xf0   : > { %v334_v38 = vmul.f32 %v519_v19, %v321_v30  ;;  %v338_v39 = vmul.f32 %v519_v19, %v325_v31  ;;  %v350_v47 = vadd.f32 %v520_v36, %v337_v37  ;;  %v346_v52 = vadd.f32 %v520_v36, %v333_v43 }
  0xf1   : > { %v332_v40 = vmul.f32 %v519_v19, %v319_v34  ;;  %v336_v41 = vmul.f32 %v519_v19, %v323_v35  ;;  %v348_v42 = vadd.f32 %v520_v36, %v335_v33  ;;  %v344_v45 = vadd.f32 %v520_v36, %v331_v32 }
  0xf2   : > { %v347_v48 = vadd.f32 %v520_v36, %v334_v38  ;;  %v351_v49 = vadd.f32 %v520_v36, %v338_v39 }
  0xf3   : > { %v349_v44 = vadd.f32 %v520_v36, %v336_v41  ;;  %v345_v46 = vadd.f32 %v520_v36, %v332_v40 }
  0xf4   : > { %v596_v53 = vpack.i.bf16 %v351_v49, %v350_v47  ;;  %v586_v54 = vpack.i.bf16 %v347_v48, %v346_v52 }
  0xf5   : > { %v591_v50 = vpack.i.bf16 %v349_v44, %v348_v42  ;;  %v581_v51 = vpack.i.bf16 %v345_v46, %v344_v45 }
  0xf7   : > { %592 = vrot.lane.b32.xlu1 %v591_v50, %s637_s6  ;;  %582 = vrot.lane.b32.xlu0 %v581_v51, %s637_s6 }
  0xfb   : > { %597 = vrot.lane.b32.xlu1 %v596_v53, %s637_s6  ;;  %587 = vrot.lane.b32.xlu0 %v586_v54, %s637_s6 }
 0x169   : > { %v593_v55 = vpop.permute.xlu1 %592  ;;  %v583_v56 = vpop.permute.xlu0 %582 }
 0x16a   : > { %v585_v57 = vunpack.i.h.bf16 %v583_v56  ;;  %v584_v58 = vunpack.i.l.bf16 %v583_v56  ;;  %v595_v59 = vunpack.i.h.bf16 %v593_v55  ;;  %v594_v60 = vunpack.i.l.bf16 %v593_v55 }
 0x16c   : > { %v369_v61 = vmax.f32 %v345_v46, %v585_v57  ;;  %v368_v62 = vmax.f32 %v344_v45, %v584_v58  ;;  %v373_v5 = vmax.f32 %v349_v44, %v595_v59  ;;  %v372_v6 = vmax.f32 %v348_v42, %v594_v60 }
 0x16d   : > { %v598_v63 = vpop.permute.xlu1 %597  ;;  %v588_v0 = vpop.permute.xlu0 %587 }
 0x16e   : > { %v600_v1 = vunpack.i.h.bf16 %v598_v63  ;;  %v599_v2 = vunpack.i.l.bf16 %v598_v63  ;;  %v590_v3 = vunpack.i.h.bf16 %v588_v0  ;;  %v589_v4 = vunpack.i.l.bf16 %v588_v0 }
 0x16f   : > { %v606_v7 = vpack.i.bf16 %v369_v61, %v368_v62  ;;  %v611_v13 = vpack.i.bf16 %v373_v5, %v372_v6 }
 0x170   : > { %v371_v8 = vmax.f32 %v347_v48, %v590_v3  ;;  %v370_v9 = vmax.f32 %v346_v52, %v589_v4  ;;  %v375_v10 = vmax.f32 %v351_v49, %v600_v1  ;;  %v374_v11 = vmax.f32 %v350_v47, %v599_v2 }
 0x171   : > { %607 = vrot.lane.b32.xlu0 %v606_v7, %s638_s7 }
 0x172   : > { %v601_v12 = vpack.i.bf16 %v371_v8, %v370_v9  ;;  %v616_v14 = vpack.i.bf16 %v375_v10, %v374_v11 }
 0x174   : > { %602 = vrot.lane.b32.xlu1 %v601_v12, %s638_s7 }
 0x175   : > { %612 = vrot.lane.b32.xlu0 %v611_v13, %s638_s7 }
 0x178   : > { %617 = vrot.lane.b32.xlu1 %v616_v14, %s638_s7 }
 0x1e3   : > { %v608_v15 = vpop.permute.xlu0 %607 }
 0x1e4   : > { %v610_v16 = vunpack.i.h.bf16 %v608_v15  ;;  %v609_v17 = vunpack.i.l.bf16 %v608_v15 }
 0x1e6   : > { %v393_v18 = vmax.f32 %v369_v61, %v610_v16  ;;  %v392_v19 = vmax.f32 %v368_v62, %v609_v17  ;;  %v603_v20 = vpop.permute.xlu1 %602 }
 0x1e7   : > { %v605_v21 = vunpack.i.h.bf16 %v603_v20  ;;  %v604_v22 = vunpack.i.l.bf16 %v603_v20  ;;  %v613_v23 = vpop.permute.xlu0 %612 }
 0x1e8   : > { %v532_v24 = vpack.c.bf16 %v393_v18, %v393_v18  ;;  %v531_v25 = vpack.c.bf16 %v392_v19, %v392_v19  ;;  %v615_v26 = vunpack.i.h.bf16 %v613_v23  ;;  %v614_v27 = vunpack.i.l.bf16 %v613_v23 }
 0x1e9   : > { %v395_v28 = vmax.f32 %v371_v8, %v605_v21  ;;  %v394_v29 = vmax.f32 %v370_v9, %v604_v22 }
 0x1ea   : > { %434 = vst.msk [vmem:[%s705_s10 + $0x4] sm:$0xf] %vm432_vm1, %v532_v24  ;;  %433 = vst.msk [vmem:[%s705_s10] sm:$0xf] %vm432_vm1, %v531_v25  ;;  %v397_v30 = vmax.f32 %v373_v5, %v615_v26  ;;  %v396_v31 = vmax.f32 %v372_v6, %v614_v27  ;;  %v618_v32 = vpop.permute.xlu1 %617 }
 0x1eb   : > { %v534_v33 = vpack.c.bf16 %v395_v28, %v395_v28  ;;  %v533_v34 = vpack.c.bf16 %v394_v29, %v394_v29  ;;  %v620_v35 = vunpack.i.h.bf16 %v618_v32  ;;  %v619_v36 = vunpack.i.l.bf16 %v618_v32 }
 0x1ec   : > { %v536_v37 = vpack.c.bf16 %v397_v30, %v397_v30  ;;  %v535_v38 = vpack.c.bf16 %v396_v31, %v396_v31 }
 0x1ed   : > { %436 = vst.msk [vmem:[%s705_s10 + $0xc] sm:$0xf] %vm432_vm1, %v534_v33  ;;  %435 = vst.msk [vmem:[%s705_s10 + $0x8] sm:$0xf] %vm432_vm1, %v533_v34  ;;  %v399_v39 = vmax.f32 %v375_v10, %v620_v35  ;;  %v398_v40 = vmax.f32 %v374_v11, %v619_v36 }
 0x1ee   : > { %438 = vst.msk [vmem:[%s705_s10 + $0x14] sm:$0xf] %vm432_vm1, %v536_v37  ;;  %437 = vst.msk [vmem:[%s705_s10 + $0x10] sm:$0xf] %vm432_vm1, %v535_v38 }
 0x1ef   : > { %v538_v41 = vpack.c.bf16 %v399_v39, %v399_v39  ;;  %v537_v42 = vpack.c.bf16 %v398_v40, %v398_v40 }
 0x1f1   : > { %440 = vst.msk [vmem:[%s705_s10 + $0x1c] sm:$0xf] %vm432_vm1, %v538_v41  ;;  %439 = vst.msk [vmem:[%s705_s10 + $0x18] sm:$0xf] %vm432_vm1, %v537_v42 }
 0x1f2 PF: > { %s13_s12 = sadd.s32 1, %s635_s12  }
 0x1f3   : > { %p10_p4 = scmp.ge.s32.totalorder %s13_s12, 4  }
 0x1f5   :  { %12 = sbr.rel (!%p10_p4) target bundleno = 1 (0x1), region = 62 }

// kernel: _lambda_.5
= control target key start
LH: loop header
LB: loop body
LE: loop exit
PB: predicated region body
PF: predicated region fallthrough
CT: control target
= control target key end

     0   :  { %s828_s12 = smov 0   ;;  %s956_s0 = inlined_call_operand.vmem [shape: bf16[32,512], index: 0, kind: input, shape index: {}]   ;;  %s957_s1 = inlined_call_operand.vmem [shape: bf16[512,128], index: 1, kind: input, shape index: {}]   ;;  %s958_s2 = inlined_call_operand.vmem [shape: f32[3,128], index: 2, kind: input, shape index: {}]   ;;  %s959_s3 = inlined_call_operand.vmem [shape: bf16[32,32], index: 3, kind: output, shape index: {}]  }
   0x1 LB: > { %s640_s13 = sadd.s32 4294967295, %s804_s12   ;;  %p644_p0 = scmp.ge.s32.totalorder %s804_s12, 1  ;;  %s804_s12 = sphi %s828_s12, %s13_s12  }
   0x2   : > { %p139_p1 = scmp.lt.s32.totalorder %s804_s12, 3 }
   0x4   : > { %p140_p2 = pnand %p644_p0, %p139_p1 }
   0x5   : > { %v760_v0 = vld [vmem:[%s957_s1 + $0x40] sm:$0xff] (!%p140_p2)   ;;  %v764_v4 = vld [vmem:[%s957_s1 + $0x48] sm:$0xff] (!%p140_p2)   ;;  %v768_v8 = vld [vmem:[%s957_s1 + $0x50] sm:$0xff] (!%p140_p2)   ;;  %s645_s21 = sshll.u32 (!%p140_p2), %s640_s13, 1  ;;  %s806_s11 = smov (!%p140_p2), 32   ;;  %vm581_vm0 = vcmask (!%p140_p2), 257024  }
   0x6   : > { %143 = sbr.rel (%p140_p2) target bundleno = 511 (0x1ff), region = 32  ;;  %v761_v1 = vld [vmem:[%s957_s1 + $0xc0] sm:$0xff] (!%p140_p2)   ;;  %696 = vmatprep.subr.bf16.mxu0 (!%p140_p2), %v760_v0  ;;  %v765_v5 = vld [vmem:[%s957_s1 + $0xc8] sm:$0xff] (!%p140_p2)   ;;  %v769_v9 = vld [vmem:[%s957_s1 + $0xd0] sm:$0xff] (!%p140_p2)   ;;  %p165_p3 = scmp.lt.s32.totalorder (!%p140_p2), %s645_s21, 3 }
   0x7   : > { %v762_v2 = vld [vmem:[%s957_s1] sm:$0xff] (!%p140_p2)   ;;  %718 = vmatprep.subr.bf16.mxu1 (!%p140_p2), %v761_v1  ;;  %v766_v6 = vld [vmem:[%s957_s1 + $0x8] sm:$0xff] (!%p140_p2)   ;;  %v770_v10 = vld [vmem:[%s957_s1 + $0x10] sm:$0xff] (!%p140_p2)   ;;  %s807_s14 = smov (!%p140_p2), 64  }
   0x8   : > { %v763_v3 = vld [vmem:[%s957_s1 + $0x80] sm:$0xff] (!%p140_p2)   ;;  %697 = vmatpush3.bf16.msra.mxu0 (!%p140_p2), %v762_v2  ;;  %v767_v7 = vld [vmem:[%s957_s1 + $0x88] sm:$0xff] (!%p140_p2)   ;;  %v771_v11 = vld [vmem:[%s957_s1 + $0x90] sm:$0xff] (!%p140_p2)  }
   0x9   : > { %719 = vmatpush3.bf16.msra.mxu1 (!%p140_p2), %v763_v3  ;;  %698 = vmatprep.subr.bf16.mxu0 (!%p140_p2), %v764_v4  ;;  %v772_v12 = vld [vmem:[%s957_s1 + $0x58] sm:$0xff] (!%p140_p2)   ;;  %v776_v16 = vld [vmem:[%s957_s1 + $0x60] sm:$0xff] (!%p140_p2)   ;;  %v780_v20 = vld [vmem:[%s957_s1 + $0x68] sm:$0xff] (!%p140_p2)  }
   0xa   : > { %720 = vmatprep.subr.bf16.mxu1 (!%p140_p2), %v765_v5  ;;  %v773_v13 = vld [vmem:[%s957_s1 + $0xd8] sm:$0xff] (!%p140_p2)   ;;  %v777_v17 = vld [vmem:[%s957_s1 + $0xe0] sm:$0xff] (!%p140_p2)   ;;  %v781_v21 = vld [vmem:[%s957_s1 + $0xe8] sm:$0xff] (!%p140_p2)  }
   0xb   : > { %v774_v14 = vld [vmem:[%s957_s1 + $0x18] sm:$0xff] (!%p140_p2)   ;;  %v778_v18 = vld [vmem:[%s957_s1 + $0x20] sm:$0xff] (!%p140_p2)   ;;  %v782_v22 = vld [vmem:[%s957_s1 + $0x28] sm:$0xff] (!%p140_p2)  }
   0xc   : > { %699 = vmatpush3.bf16.msra.mxu0 (!%p140_p2), %v766_v6  ;;  %v775_v15 = vld [vmem:[%s957_s1 + $0x98] sm:$0xff] (!%p140_p2)   ;;  %v779_v19 = vld [vmem:[%s957_s1 + $0xa0] sm:$0xff] (!%p140_p2)   ;;  %v783_v23 = vld [vmem:[%s957_s1 + $0xa8] sm:$0xff] (!%p140_p2)  }
   0xd   : > { %721 = vmatpush3.bf16.msra.mxu1 %v767_v7  ;;  %700 = vmatprep.subr.bf16.mxu0 %v768_v8  ;;  %s961_s21 = smov (!%p165_p3, %s645_s21), 3  ;;  %v784_v24 = vld [vmem:[%s957_s1 + $0x70] sm:$0xff]   ;;  %v788_v28 = vld [vmem:[%s957_s1 + $0x78] sm:$0xff]   ;;  %v650_v38 = vld [vmem:[%s958_s2] ss:$0 sm:$0xff] }
   0xe   : > { %722 = vmatprep.subr.bf16.mxu1 %v769_v9  ;;  %v785_v25 = vld [vmem:[%s957_s1 + $0xf0] sm:$0xff]   ;;  %s693_s18 = sshll.u32 %s961_s21, 4  ;;  %v789_v29 = vld [vmem:[%s957_s1 + $0xf8] sm:$0xff]   ;;  %v687_v52 = vld [vmem:[%s958_s2 + $0x1] ss:$0 sm:$0xff]  ;;  %s649_s15 = sshll.u32 %s961_s21, 2 }
   0xf   : > { %v786_v26 = vld [vmem:[%s957_s1 + $0x30] sm:$0xff]   ;;  %s169_s28 = scalar_lea.vmem %s956_s0, %s693_s18  ;;  %v790_v30 = vld [vmem:[%s957_s1 + $0x38] sm:$0xff]   ;;  %v688_v57 = vld [vmem:[%s958_s2 + $0x2] ss:$0 sm:$0xff]  ;;  %s175_s18 = scalar_lea.vmem %s959_s3, %s649_s15 }
  0x10   : > { %701 = vmatpush3.bf16.msra.mxu0 %v770_v10  ;;  %v787_v27 = vld [vmem:[%s957_s1 + $0xb0] sm:$0xff]   ;;  %v791_v31 = vld [vmem:[%s957_s1 + $0xb8] sm:$0xff]  }
  0x11   : > { %723 = vmatpush3.bf16.msra.mxu1 %v771_v11  ;;  %702 = vmatprep.subr.bf16.mxu0 %v772_v12  ;;  %v792_v32 = vld [vmem:[%s169_s28] ss:$16 sps:$4 sm:$0xff]   ;;  %v794_v33 = vld [vmem:[%s169_s28 + $0x4] ss:$16 sps:$4 sm:$0xff]   ;;  %v795_v34 = vld [vmem:[%s169_s28 + $0x8] ss:$16 sps:$4 sm:$0xff]  }
  0x12   : > { %724 = vmatprep.subr.bf16.mxu1 %v773_v13  ;;  %v797_v35 = vld [vmem:[%s169_s28 + $0xc] ss:$16 sps:$4 sm:$0xff]   ;;  %495 = vmatprep.mubr.bf16.mxu0 %v794_v33 }
  0x13   : > { %536 = vmatprep.mubr.bf16.mxu1 %v797_v35 }
  0x14   : > { %703 = vmatpush3.bf16.msra.mxu0 %v774_v14 }
  0x15   : > { %725 = vmatpush3.bf16.msra.mxu1 %v775_v15  ;;  %704 = vmatprep.subr.bf16.mxu0 %v776_v16 }
  0x16   : > { %726 = vmatprep.subr.bf16.mxu1 %v777_v17 }
  0x18   : > { %705 = vmatpush3.bf16.msra.mxu0 %v778_v18 }
  0x19   : > { %727 = vmatpush3.bf16.msra.mxu1 %v779_v19  ;;  %706 = vmatprep.subr.bf16.mxu0 %v780_v20 }
  0x1a   : > { %728 = vmatprep.subr.bf16.mxu1 %v781_v21 }
  0x1c   : > { %707 = vmatpush3.bf16.msra.mxu0 %v782_v22 }
  0x1d   : > { %729 = vmatpush3.bf16.msra.mxu1 %v783_v23  ;;  %708 = vmatprep.subr.bf16.mxu0 %v784_v24 }
  0x1e   : > { %730 = vmatprep.subr.bf16.mxu1 %v785_v25 }
  0x20   : > { %709 = vmatpush3.bf16.msra.mxu0 %v786_v26 }
  0x21   : > { %731 = vmatpush3.bf16.msra.mxu1 %v787_v27  ;;  %710 = vmatprep.subr.bf16.mxu0 %v788_v28 }
  0x22   : > { %732 = vmatprep.subr.bf16.mxu1 %v789_v29 }
  0x24   : > { %711 = vmatpush3.bf16.msra.mxu0 %v790_v30 }
  0x25   : > { %733 = vmatpush3.bf16.msra.mxu1 %v791_v31 }
  0x27   : > { %496 = vmatmul.mubr.bf16.vlgmr.msra.gmra.mrb[0].mxu0 %v792_v32 }
  0x28   : > { %537 = vmatmul.mubr.bf16.vlgmr.msra.gmra.mrb[0].mxu1 %v795_v34 }
  0xfa   : > { %v712_v36 = vpop.f32.mrb[0].mxu0 }
  0xfb   : > { %v734_v37 = vpop.f32.mrb[0].mxu1  ;;  %v713_v39 = vpop.f32.mrb[1].mxu0 }
  0xfc   : > { %v714_v40 = vadd.f32 %v713_v39, %v712_v36  ;;  %v735_v41 = vpop.f32.mrb[1].mxu1  ;;  %v715_v42 = vpop.f32.mrb[2].mxu0 }
  0xfd   : > { %v736_v43 = vadd.f32 %v735_v41, %v734_v37  ;;  %v737_v44 = vpop.f32.mrb[2].mxu1  ;;  %v716_v45 = vpop.f32.mrb[3].mxu0 }
  0xfe   : > { %v498_v46 = vadd.f32 %v714_v40, %v650_v38  ;;  %v717_v47 = vadd.f32 %v716_v45, %v715_v42  ;;  %v738_v48 = vpop.f32.mrb[3].mxu1 }
  0xff   : > { %v739_v49 = vadd.f32 %v738_v48, %v737_v44 }
 0x100   : > { %v539_v50 = vadd.f32 %v736_v43, %v498_v46  ;;  %v501_v51 = vadd.f32 %v717_v47, %v650_v38 }
 0x102   : > { %v545_v53 = vmax.f32 %v539_v50, 0.0  ;;  %v542_v54 = vadd.f32 %v739_v49, %v501_v51 }
 0x104   : > { %v552_v55 = vmul.f32 %v687_v52, %v545_v53  ;;  %v546_v56 = vmax.f32 %v542_v54, 0.0 }
 0x106   : > { %v553_v58 = vmul.f32 %v687_v52, %v546_v56  ;;  %v559_v59 = vadd.f32 %v688_v57, %v552_v55 }
 0x108   : > { %v560_v60 = vadd.f32 %v688_v57, %v553_v58 }
 0x10a   : > { %v750_v61 = vpack.i.bf16 %v560_v60, %v559_v59 }
 0x10c   : > { %751 = vrot.lane.b32.xlu0 %v750_v61, %s806_s11 }
 0x17e   : > { %v752_v62 = vpop.permute.xlu0 %751 }
 0x17f   : > { %v754_v63 = vunpack.i.h.bf16 %v752_v62  ;;  %v753_v0 = vunpack.i.l.bf16 %v752_v62 }
 0x181   : > { %v566_v1 = vmax.f32 %v560_v60, %v754_v63  ;;  %v565_v2 = vmax.f32 %v559_v59, %v753_v0 }
 0x183   : > { %v755_v3 = vpack.i.bf16 %v566_v1, %v565_v2 }
 0x185   : > { %756 = vrot.lane.b32.xlu0 %v755_v3, %s807_s14 }
 0x1f7   : > { %v757_v4 = vpop.permute.xlu0 %756 }
 0x1f8   : > { %v759_v5 = vunpack.i.h.bf16 %v757_v4  ;;  %v758_v6 = vunpack.i.l.bf16 %v757_v4 }
 0x1fa   : > { %v572_v7 = vmax.f32 %v566_v1, %v759_v5  ;;  %v571_v8 = vmax.f32 %v565_v2, %v758_v6 }
 0x1fc   : > { %v695_v9 = vpack.c.bf16 %v572_v7, %v572_v7  ;;  %v694_v10 = vpack.c.bf16 %v571_v8, %v571_v8 }
 0x1fe   : > { %582 = vst.msk [vmem:[%s175_s18] sm:$0xf] %vm581_vm0, %v694_v10  ;;  %583 = vst.msk [vmem:[%s175_s18 + $0x4] sm:$0xf] %vm581_vm0, %v695_v9 }
 0x1ff PF: > { %s13_s12 = sadd.s32 1, %s804_s12  }
 0x200   : > { %p10_p4 = scmp.ge.s32.totalorder %s13_s12, 4  }
 0x202   :  { %12 = sbr.rel (!%p10_p4) target bundleno = 1 (0x1), region = 62 }

// kernel: _lambda_.6
= control target key start
LH: loop header
LB: loop body
LE: loop exit
PB: predicated region body
PF: predicated region fallthrough
CT: control target
= control target key end

     0   :  { %s519_s30 = smov 32   ;;  %s520_s4 = smov 64   ;;  %vm392_vm0 = vcmask 257024   ;;  %s655_s1 = inlined_call_operand.vmem [shape: bf16[512,128], index: 1, kind: input, shape index: {}]   ;;  %s656_s0 = inlined_call_operand.vmem [shape: bf16[8,512], index: 0, kind: input, shape index: {}]   ;;  %s657_s2 = inlined_call_operand.vmem [shape: f32[3,128], index: 2, kind: input, shape index: {}]   ;;  %s658_s3 = inlined_call_operand.vmem [shape: bf16[8,32], index: 3, kind: output, shape index: {}]  }
   0x1   :  { %v483_v0 = vld [vmem:[%s655_s1 + $0x40] sm:$0xff]   ;;  %v487_v4 = vld [vmem:[%s655_s1 + $0x48] sm:$0xff]   ;;  %v491_v8 = vld [vmem:[%s655_s1 + $0x50] sm:$0xff]  }
   0x2   :  { %v484_v1 = vld [vmem:[%s655_s1 + $0xc0] sm:$0xff]   ;;  %437 = vmatprep.subr.bf16.mxu0 %v483_v0  ;;  %v488_v5 = vld [vmem:[%s655_s1 + $0xc8] sm:$0xff]   ;;  %v492_v9 = vld [vmem:[%s655_s1 + $0xd0] sm:$0xff]  }
   0x3   :  { %v485_v2 = vld [vmem:[%s655_s1] sm:$0xff]   ;;  %459 = vmatprep.subr.bf16.mxu1 %v484_v1  ;;  %v489_v6 = vld [vmem:[%s655_s1 + $0x8] sm:$0xff]   ;;  %v493_v10 = vld [vmem:[%s655_s1 + $0x10] sm:$0xff]  }
   0x4   :  { %v486_v3 = vld [vmem:[%s655_s1 + $0x80] sm:$0xff]   ;;  %438 = vmatpush3.bf16.msra.mxu0 %v485_v2  ;;  %v490_v7 = vld [vmem:[%s655_s1 + $0x88] sm:$0xff]   ;;  %v494_v11 = vld [vmem:[%s655_s1 + $0x90] sm:$0xff]  }
   0x5   :  { %460 = vmatpush3.bf16.msra.mxu1 %v486_v3  ;;  %439 = vmatprep.subr.bf16.mxu0 %v487_v4  ;;  %v495_v12 = vld [vmem:[%s655_s1 + $0x58] sm:$0xff]   ;;  %v499_v16 = vld [vmem:[%s655_s1 + $0x60] sm:$0xff]   ;;  %v503_v20 = vld [vmem:[%s655_s1 + $0x68] sm:$0xff]  }
   0x6   :  { %461 = vmatprep.subr.bf16.mxu1 %v488_v5  ;;  %v496_v13 = vld [vmem:[%s655_s1 + $0xd8] sm:$0xff]   ;;  %v500_v17 = vld [vmem:[%s655_s1 + $0xe0] sm:$0xff]   ;;  %v504_v21 = vld [vmem:[%s655_s1 + $0xe8] sm:$0xff]  }
   0x7   :  { %v497_v14 = vld [vmem:[%s655_s1 + $0x18] sm:$0xff]   ;;  %v501_v18 = vld [vmem:[%s655_s1 + $0x20] sm:$0xff]   ;;  %v505_v22 = vld [vmem:[%s655_s1 + $0x28] sm:$0xff]  }
   0x8   :  { %440 = vmatpush3.bf16.msra.mxu0 %v489_v6  ;;  %v498_v15 = vld [vmem:[%s655_s1 + $0x98] sm:$0xff]   ;;  %v502_v19 = vld [vmem:[%s655_s1 + $0xa0] sm:$0xff]   ;;  %v506_v23 = vld [vmem:[%s655_s1 + $0xa8] sm:$0xff]  }
   0x9   :  { %462 = vmatpush3.bf16.msra.mxu1 %v490_v7  ;;  %441 = vmatprep.subr.bf16.mxu0 %v491_v8  ;;  %v507_v24 = vld [vmem:[%s655_s1 + $0x70] sm:$0xff]   ;;  %v511_v28 = vld [vmem:[%s655_s1 + $0x78] sm:$0xff]   ;;  %v15_v32 = vld [vmem:[%s656_s0] sm:$0xff] }
   0xa   :  { %463 = vmatprep.subr.bf16.mxu1 %v492_v9  ;;  %v508_v25 = vld [vmem:[%s655_s1 + $0xf0] sm:$0xff]   ;;  %v512_v29 = vld [vmem:[%s655_s1 + $0xf8] sm:$0xff]   ;;  %v16_v33 = vld [vmem:[%s656_s0 + $0x8] sm:$0xff]  ;;  %v399_v34 = vcombine.low %v15_v32, %v15_v32  ;;  %v400_v35 = vcombine.high %v15_v32, %v15_v32 }
   0xb   :  { %v509_v26 = vld [vmem:[%s655_s1 + $0x30] sm:$0xff]   ;;  %v513_v30 = vld [vmem:[%s655_s1 + $0x38] sm:$0xff]   ;;  %v401_v36 = vcombine.low %v16_v33, %v16_v33  ;;  %v402_v37 = vcombine.high %v16_v33, %v16_v33  ;;  %v398_v40 = vld [vmem:[%s657_s2] ss:$0 sm:$0xff] }
   0xc   :  { %442 = vmatpush3.bf16.msra.mxu0 %v493_v10  ;;  %v510_v27 = vld [vmem:[%s655_s1 + $0xb0] sm:$0xff]   ;;  %v514_v31 = vld [vmem:[%s655_s1 + $0xb8] sm:$0xff]   ;;  %324 = vmatprep.mubr.bf16.mxu0 %v400_v35  ;;  %v435_v51 = vld [vmem:[%s657_s2 + $0x1] ss:$0 sm:$0xff] }
   0xd   :  { %464 = vmatpush3.bf16.msra.mxu1 %v494_v11  ;;  %443 = vmatprep.subr.bf16.mxu0 %v495_v12  ;;  %v436_v53 = vld [vmem:[%s657_s2 + $0x2] ss:$0 sm:$0xff] }
   0xe   :  { %465 = vmatprep.subr.bf16.mxu1 %v496_v13  ;;  %364 = vmatprep.mubr.bf16.mxu1 %v402_v37 }
  0x10   :  { %444 = vmatpush3.bf16.msra.mxu0 %v497_v14 }
  0x11   :  { %466 = vmatpush3.bf16.msra.mxu1 %v498_v15  ;;  %445 = vmatprep.subr.bf16.mxu0 %v499_v16 }
  0x12   :  { %467 = vmatprep.subr.bf16.mxu1 %v500_v17 }
  0x14   :  { %446 = vmatpush3.bf16.msra.mxu0 %v501_v18 }
  0x15   :  { %468 = vmatpush3.bf16.msra.mxu1 %v502_v19  ;;  %447 = vmatprep.subr.bf16.mxu0 %v503_v20 }
  0x16   :  { %469 = vmatprep.subr.bf16.mxu1 %v504_v21 }
  0x18   :  { %448 = vmatpush3.bf16.msra.mxu0 %v505_v22 }
  0x19   :  { %470 = vmatpush3.bf16.msra.mxu1 %v506_v23  ;;  %449 = vmatprep.subr.bf16.mxu0 %v507_v24 }
  0x1a   :  { %471 = vmatprep.subr.bf16.mxu1 %v508_v25 }
  0x1c   :  { %450 = vmatpush3.bf16.msra.mxu0 %v509_v26 }
  0x1d   :  { %472 = vmatpush3.bf16.msra.mxu1 %v510_v27  ;;  %451 = vmatprep.subr.bf16.mxu0 %v511_v28 }
  0x1e   :  { %473 = vmatprep.subr.bf16.mxu1 %v512_v29 }
  0x20   :  { %452 = vmatpush3.bf16.msra.mxu0 %v513_v30 }
  0x21   :  { %474 = vmatpush3.bf16.msra.mxu1 %v514_v31 }
  0x23   :  { %325 = vmatmul.mubr.bf16.vlgmr.msra.gmra.mrb[0].mxu0 %v399_v34 }
  0x24   :  { %365 = vmatmul.mubr.bf16.vlgmr.msra.gmra.mrb[0].mxu1 %v401_v36 }
  0xf6   :  { %v453_v38 = vpop.f32.mrb[0].mxu0 }
  0xf7   :  { %v475_v39 = vpop.f32.mrb[0].mxu1  ;;  %v454_v41 = vpop.f32.mrb[1].mxu0 }
  0xf8   :  { %v476_v42 = vpop.f32.mrb[1].mxu1  ;;  %v455_v43 = vadd.f32 %v454_v41, %v453_v38  ;;  %v456_v45 = vpop.f32.mrb[2].mxu0 }
  0xf9   :  { %v477_v44 = vadd.f32 %v476_v42, %v475_v39  ;;  %v478_v46 = vpop.f32.mrb[2].mxu1  ;;  %v457_v47 = vpop.f32.mrb[3].mxu0 }
  0xfa   :  { %v479_v48 = vpop.f32.mrb[3].mxu1  ;;  %v327_v49 = vadd.f32 %v455_v43, %v398_v40 }
  0xfc   :  { %v367_v50 = vadd.f32 %v477_v44, %v327_v49 }
  0xfe   :  { %v372_v52 = vmax.f32 %v367_v50, 0.0 }
 0x100   :  { %v378_v54 = vmul.f32 %v435_v51, %v372_v52 }
 0x102   :  { %v384_v55 = vadd.f32 %v436_v53, %v378_v54 }
 0x104   :  { %385 = vrot.lane.b32.xlu0 %v384_v55, %s519_s30 }
 0x176   :  { %v386_v56 = vpop.permute.xlu0 %385 }
 0x177   :  { %v387_v57 = vmax.f32 %v384_v55, %v386_v56 }
 0x179   :  { %388 = vrot.lane.b32.xlu0 %v387_v57, %s520_s4 }
 0x1eb   :  { %v389_v58 = vpop.permute.xlu0 %388 }
 0x1ec   :  { %v390_v59 = vmax.f32 %v387_v57, %v389_v58 }
 0x1ee   :  { %v391_v60 = vpack.c.bf16 %v390_v59, %v390_v59 }
 0x1f0   :  { %393 = vst.msk [vmem:[%s658_s3] sm:$0xf] %vm392_vm0, %v391_v60 }

// kernel: _lambda_.7
= control target key start
LH: loop header
LB: loop body
LE: loop exit
PB: predicated region body
PF: predicated region fallthrough
CT: control target
= control target key end

     0   :  { %s518_s30 = smov 32   ;;  %s519_s4 = smov 64   ;;  %vm391_vm0 = vcmask 261120   ;;  %s654_s1 = inlined_call_operand.vmem [shape: bf16[512,128], index: 1, kind: input, shape index: {}]   ;;  %s655_s0 = inlined_call_operand.vmem [shape: bf16[8,512], index: 0, kind: input, shape index: {}]   ;;  %s656_s2 = inlined_call_operand.vmem [shape: f32[3,128], index: 2, kind: input, shape index: {}]   ;;  %s657_s3 = inlined_call_operand.vmem [shape: f32[8,32], index: 3, kind: output, shape index: {}]  }
   0x1   :  { %v482_v0 = vld [vmem:[%s654_s1 + $0x40] sm:$0xff]   ;;  %v486_v4 = vld [vmem:[%s654_s1 + $0x48] sm:$0xff]   ;;  %v490_v8 = vld [vmem:[%s654_s1 + $0x50] sm:$0xff]  }
   0x2   :  { %v483_v1 = vld [vmem:[%s654_s1 + $0xc0] sm:$0xff]   ;;  %436 = vmatprep.subr.bf16.mxu0 %v482_v0  ;;  %v487_v5 = vld [vmem:[%s654_s1 + $0xc8] sm:$0xff]   ;;  %v491_v9 = vld [vmem:[%s654_s1 + $0xd0] sm:$0xff]  }
   0x3   :  { %v484_v2 = vld [vmem:[%s654_s1] sm:$0xff]   ;;  %458 = vmatprep.subr.bf16.mxu1 %v483_v1  ;;  %v488_v6 = vld [vmem:[%s654_s1 + $0x8] sm:$0xff]   ;;  %v492_v10 = vld [vmem:[%s654_s1 + $0x10] sm:$0xff]  }
   0x4   :  { %v485_v3 = vld [vmem:[%s654_s1 + $0x80] sm:$0xff]   ;;  %437 = vmatpush3.bf16.msra.mxu0 %v484_v2  ;;  %v489_v7 = vld [vmem:[%s654_s1 + $0x88] sm:$0xff]   ;;  %v493_v11 = vld [vmem:[%s654_s1 + $0x90] sm:$0xff]  }
   0x5   :  { %459 = vmatpush3.bf16.msra.mxu1 %v485_v3  ;;  %438 = vmatprep.subr.bf16.mxu0 %v486_v4  ;;  %v494_v12 = vld [vmem:[%s654_s1 + $0x58] sm:$0xff]   ;;  %v498_v16 = vld [vmem:[%s654_s1 + $0x60] sm:$0xff]   ;;  %v502_v20 = vld [vmem:[%s654_s1 + $0x68] sm:$0xff]  }
   0x6   :  { %460 = vmatprep.subr.bf16.mxu1 %v487_v5  ;;  %v495_v13 = vld [vmem:[%s654_s1 + $0xd8] sm:$0xff]   ;;  %v499_v17 = vld [vmem:[%s654_s1 + $0xe0] sm:$0xff]   ;;  %v503_v21 = vld [vmem:[%s654_s1 + $0xe8] sm:$0xff]  }
   0x7   :  { %v496_v14 = vld [vmem:[%s654_s1 + $0x18] sm:$0xff]   ;;  %v500_v18 = vld [vmem:[%s654_s1 + $0x20] sm:$0xff]   ;;  %v504_v22 = vld [vmem:[%s654_s1 + $0x28] sm:$0xff]  }
   0x8   :  { %439 = vmatpush3.bf16.msra.mxu0 %v488_v6  ;;  %v497_v15 = vld [vmem:[%s654_s1 + $0x98] sm:$0xff]   ;;  %v501_v19 = vld [vmem:[%s654_s1 + $0xa0] sm:$0xff]   ;;  %v505_v23 = vld [vmem:[%s654_s1 + $0xa8] sm:$0xff]  }
   0x9   :  { %461 = vmatpush3.bf16.msra.mxu1 %v489_v7  ;;  %440 = vmatprep.subr.bf16.mxu0 %v490_v8  ;;  %v506_v24 = vld [vmem:[%s654_s1 + $0x70] sm:$0xff]   ;;  %v510_v28 = vld [vmem:[%s654_s1 + $0x78] sm:$0xff]   ;;  %v15_v32 = vld [vmem:[%s655_s0] sm:$0xff] }
   0xa   :  { %462 = vmatprep.subr.bf16.mxu1 %v491_v9  ;;  %v507_v25 = vld [vmem:[%s654_s1 + $0xf0] sm:$0xff]   ;;  %v511_v29 = vld [vmem:[%s654_s1 + $0xf8] sm:$0xff]   ;;  %v16_v33 = vld [vmem:[%s655_s0 + $0x8] sm:$0xff]  ;;  %v398_v34 = vcombine.low %v15_v32, %v15_v32  ;;  %v399_v35 = vcombine.high %v15_v32, %v15_v32 }
   0xb   :  { %v508_v26 = vld [vmem:[%s654_s1 + $0x30] sm:$0xff]   ;;  %v512_v30 = vld [vmem:[%s654_s1 + $0x38] sm:$0xff]   ;;  %v400_v36 = vcombine.low %v16_v33, %v16_v33  ;;  %v401_v37 = vcombine.high %v16_v33, %v16_v33  ;;  %v397_v40 = vld [vmem:[%s656_s2] ss:$0 sm:$0xff] }
   0xc   :  { %441 = vmatpush3.bf16.msra.mxu0 %v492_v10  ;;  %v509_v27 = vld [vmem:[%s654_s1 + $0xb0] sm:$0xff]   ;;  %v513_v31 = vld [vmem:[%s654_s1 + $0xb8] sm:$0xff]   ;;  %324 = vmatprep.mubr.bf16.mxu0 %v399_v35  ;;  %v434_v51 = vld [vmem:[%s656_s2 + $0x1] ss:$0 sm:$0xff] }
   0xd   :  { %463 = vmatpush3.bf16.msra.mxu1 %v493_v11  ;;  %442 = vmatprep.subr.bf16.mxu0 %v494_v12  ;;  %v435_v53 = vld [vmem:[%s656_s2 + $0x2] ss:$0 sm:$0xff] }
   0xe   :  { %464 = vmatprep.subr.bf16.mxu1 %v495_v13  ;;  %364 = vmatprep.mubr.bf16.mxu1 %v401_v37 }
  0x10   :  { %443 = vmatpush3.bf16.msra.mxu0 %v496_v14 }
  0x11   :  { %465 = vmatpush3.bf16.msra.mxu1 %v497_v15  ;;  %444 = vmatprep.subr.bf16.mxu0 %v498_v16 }
  0x12   :  { %466 = vmatprep.subr.bf16.mxu1 %v499_v17 }
  0x14   :  { %445 = vmatpush3.bf16.msra.mxu0 %v500_v18 }
  0x15   :  { %467 = vmatpush3.bf16.msra.mxu1 %v501_v19  ;;  %446 = vmatprep.subr.bf16.mxu0 %v502_v20 }
  0x16   :  { %468 = vmatprep.subr.bf16.mxu1 %v503_v21 }
  0x18   :  { %447 = vmatpush3.bf16.msra.mxu0 %v504_v22 }
  0x19   :  { %469 = vmatpush3.bf16.msra.mxu1 %v505_v23  ;;  %448 = vmatprep.subr.bf16.mxu0 %v506_v24 }
  0x1a   :  { %470 = vmatprep.subr.bf16.mxu1 %v507_v25 }
  0x1c   :  { %449 = vmatpush3.bf16.msra.mxu0 %v508_v26 }
  0x1d   :  { %471 = vmatpush3.bf16.msra.mxu1 %v509_v27  ;;  %450 = vmatprep.subr.bf16.mxu0 %v510_v28 }
  0x1e   :  { %472 = vmatprep.subr.bf16.mxu1 %v511_v29 }
  0x20   :  { %451 = vmatpush3.bf16.msra.mxu0 %v512_v30 }
  0x21   :  { %473 = vmatpush3.bf16.msra.mxu1 %v513_v31 }
  0x23   :  { %325 = vmatmul.mubr.bf16.vlgmr.msra.gmra.mrb[0].mxu0 %v398_v34 }
  0x24   :  { %365 = vmatmul.mubr.bf16.vlgmr.msra.gmra.mrb[0].mxu1 %v400_v36 }
  0xf6   :  { %v452_v38 = vpop.f32.mrb[0].mxu0 }
  0xf7   :  { %v474_v39 = vpop.f32.mrb[0].mxu1  ;;  %v453_v41 = vpop.f32.mrb[1].mxu0 }
  0xf8   :  { %v475_v42 = vpop.f32.mrb[1].mxu1  ;;  %v454_v43 = vadd.f32 %v453_v41, %v452_v38  ;;  %v455_v45 = vpop.f32.mrb[2].mxu0 }
  0xf9   :  { %v476_v44 = vadd.f32 %v475_v42, %v474_v39  ;;  %v477_v46 = vpop.f32.mrb[2].mxu1  ;;  %v456_v47 = vpop.f32.mrb[3].mxu0 }
  0xfa   :  { %v478_v48 = vpop.f32.mrb[3].mxu1  ;;  %v327_v49 = vadd.f32 %v454_v43, %v397_v40 }
  0xfc   :  { %v367_v50 = vadd.f32 %v476_v44, %v327_v49 }
  0xfe   :  { %v372_v52 = vmax.f32 %v367_v50, 0.0 }
 0x100   :  { %v378_v54 = vmul.f32 %v434_v51, %v372_v52 }
 0x102   :  { %v384_v55 = vadd.f32 %v435_v53, %v378_v54 }
 0x104   :  { %385 = vrot.lane.b32.xlu0 %v384_v55, %s518_s30 }
 0x176   :  { %v386_v56 = vpop.permute.xlu0 %385 }
 0x177   :  { %v387_v57 = vmax.f32 %v384_v55, %v386_v56 }
 0x179   :  { %388 = vrot.lane.b32.xlu0 %v387_v57, %s519_s4 }
 0x1eb   :  { %v389_v58 = vpop.permute.xlu0 %388 }
 0x1ec   :  { %v390_v59 = vmax.f32 %v387_v57, %v389_v58 }
 0x1ee   :  { %392 = vst.msk [vmem:[%s657_s3] sm:$0xff] %vm391_vm0, %v390_v59 }

</bundles_post_ra>
